<compile_context>
chip_gen: v6e
topology: v6e:2x2x1
jax: 0.10.0
libtpu: 0.0.40
codegen_flags: <defaults>
</compile_context>

<pallas_src>
import functools

import jax
import jax.numpy as jnp
import numpy as np
from jax import lax
from jax.experimental import pallas as pl
from jax.experimental.pallas import tpu as pltpu


DEFAULT_BATCH_TILE = 32768  # lanes per grid step (multiple of 128)


def _round_up(x: int, m: int) -> int:
    return ((x + m - 1) // m) * m


def _vmem_capacity_bytes() -> int:
    """Generation-aware VMEM size; falls back to the smallest (v7x, 64 MiB)."""
    try:
        return int(pltpu.get_tpu_info().vmem_capacity_bytes)
    except Exception:
        return 64 << 20


def _encoder_kernel(w_ref, b_ref, x_ref, out_ref, *, act):
    # w_ref: [latent, in]   (resident across grid steps)
    # b_ref: [latent, 1]    (resident)
    # x_ref: [TB, in]       (natural layout tile -- no HBM transpose)
    # out_ref: [latent, TB] (lane-dense output tile)
    # Contract the feature axis of both operands: z = W @ x_tile.T, done on the
    # MXU with f32 accumulation; bias add on VPU; activation on EUP.
    z = lax.dot_general(
        w_ref[...], x_ref[...],
        dimension_numbers=(((1,), (1,)), ((), ())),
        preferred_element_type=jnp.float32,
    )
    out_ref[...] = act(z + b_ref[...]).astype(out_ref.dtype)


def fold_encoder_params(w1, b1, w2, b2):
    """Fold the two bias-only linears into one affine map (exact math).

    w1: [hidden, in] (torch layout),   b1: [hidden]
    w2: [latent, hidden] (torch layout), b2: [latent]
    Returns (wc, bc) with wc: [latent, in], bc: [latent, 1].
    Done once at parameter-prep time, never in the hot path.
    """
    wc = w2 @ w1
    bc = (w2 @ b1 + b2).reshape(-1, 1)
    return wc, bc


def encoder_forward(x, wc, bc, *, act=jax.nn.sigmoid,
                    batch_tile=DEFAULT_BATCH_TILE, mxu_dtype=None):
    """Encoder forward with folded params: act(x @ W1.T + b1) @ W2.T + b2).

    mxu_dtype: optionally cast x and wc (e.g. to jnp.bfloat16) to halve DMA
    bytes on the dominant operand; accumulation stays f32.  Default None (f32).
    """
    batch, in_dim = x.shape
    latent = wc.shape[0]
    out_dtype = x.dtype
    itemsize = jnp.dtype(mxu_dtype if mxu_dtype is not None else x.dtype).itemsize

    # ---- generation-aware batch-tile sizing --------------------------------
    # Natural-layout x tile (TB, in_dim) pads its lane axis to >=128 in VMEM;
    # output tile (latent, TB) pads its sublane axis to >=8.  Both double-buffered.
    lane_in = _round_up(max(in_dim, 128), 128)
    sub_out = _round_up(max(latent, 8), 8)
    per_lane_bytes = 2 * (lane_in * itemsize + sub_out * 4)  # out stays f32
    vmem_budget = _vmem_capacity_bytes() // 2                # leave compiler headroom
    cap_bt = max(128, (vmem_budget // per_lane_bytes) // 128 * 128)

    bt = max(128, (int(batch_tile) // 128) * 128)            # lane-multiple guard
    bt = min(bt, cap_bt, _round_up(batch, 128))

    n_tiles = pl.cdiv(batch, bt)
    # v7x has 2 TensorCores: keep the "parallel" grid splittable when batch allows.
    if n_tiles == 1 and _round_up(batch, 128) >= 256:
        n_tiles = 2
    bt = _round_up(pl.cdiv(batch, n_tiles), 128)
    padded_batch = n_tiles * bt

    if padded_batch != batch:
        x = jnp.pad(x, ((0, padded_batch - batch), (0, 0)))

    if mxu_dtype is not None:
        x = x.astype(mxu_dtype)
        wc = wc.astype(mxu_dtype)

    vmem_limit = max(per_lane_bytes * bt + (2 << 20), 16 << 20)

    kernel = functools.partial(_encoder_kernel, act=act)
    out_t = pl.pallas_call(
        kernel,
        out_shape=jax.ShapeDtypeStruct((latent, padded_batch), out_dtype),
        grid=(n_tiles,),
        in_specs=[
            pl.BlockSpec((latent, in_dim), lambda i: (0, 0)),  # Wc resident
            pl.BlockSpec((latent, 1), lambda i: (0, 0)),       # bc resident
            pl.BlockSpec((bt, in_dim), lambda i: (i, 0)),      # x tile, natural layout
        ],
        out_specs=pl.BlockSpec((latent, bt), lambda i: (0, i)),
        compiler_params=pltpu.CompilerParams(
            dimension_semantics=("parallel",),
            vmem_limit_bytes=int(vmem_limit),
        ),
    )(wc, bc, x)

    # Small layout plumbing: drop padded rows, flip back to [batch, latent].
    # (Downstream consumers that accept [latent, batch] can skip this.)
    return out_t[:, :batch].T


def xavier_uniform(key, fan_in, fan_out, dtype=jnp.float32):
    # Matches torch.nn.init.xavier_uniform_ (gain=1); torch weight shape [out, in].
    limit = float(np.sqrt(6.0 / (fan_in + fan_out)))
    return jax.random.uniform(
        key, (fan_out, fan_in), dtype=dtype, minval=-limit, maxval=limit
    )


def reference_forward(x, w1, b1, w2, b2, act=jax.nn.sigmoid):
    # Unfolded pure-JAX reference, matching the PyTorch forward structure.
    h = x @ w1.T + b1
    return act(h @ w2.T + b2)


if __name__ == "__main__":
    in_dim, hidden_dim, latent_dim = 16, 32, 4

    key = jax.random.PRNGKey(0)
    k_x, k_w1, k_w2, k_b1, k_b2, k_x2 = jax.random.split(key, 6)

    # Module-faithful init: xavier_uniform weights (torch [out, in]), zero biases.
    w1 = xavier_uniform(k_w1, in_dim, hidden_dim)       # [hidden, in]
    w2 = xavier_uniform(k_w2, hidden_dim, latent_dim)   # [latent, hidden]
    b1 = jnp.zeros((hidden_dim,), jnp.float32)
    b2 = jnp.zeros((latent_dim,), jnp.float32)

    # TODO(synk): act_func is a constructor argument of the PyTorch Encoder;
    # Sigmoid is assumed here (typical SINDy choice) and configurable via `act=`.
    act = jax.nn.sigmoid

    # ---- Case 1: tiny batch -> single-step grid, batch padded to 128 -------
    batch = 8
    x = jax.random.normal(k_x, (batch, in_dim), dtype=jnp.float32)
    wc, bc = fold_encoder_params(w1, b1, w2, b2)
    out = encoder_forward(x, wc, bc, act=act)
    jax.block_until_ready(out)
    ref = reference_forward(x, w1, b1, w2, b2, act)
    np.testing.assert_allclose(np.asarray(out), np.asarray(ref), rtol=1e-5, atol=1e-5)

    # ---- Case 2: batch NOT a multiple of 128 -> padded, 2-step parallel grid
    # (non-zero biases to exercise the bias fold).
    batch2 = 300
    b1n = 0.1 * jax.random.normal(k_b1, (hidden_dim,), dtype=jnp.float32)
    b2n = 0.1 * jax.random.normal(k_b2, (latent_dim,), dtype=jnp.float32)
    x2 = jax.random.normal(k_x2, (batch2, in_dim), dtype=jnp.float32)
    wc2, bc2 = fold_encoder_params(w1, b1n, w2, b2n)
    out2 = encoder_forward(x2, wc2, bc2, act=act)
    jax.block_until_ready(out2)
    ref2 = reference_forward(x2, w1, b1n, w2, b2n, act)
    np.testing.assert_allclose(np.asarray(out2), np.asarray(ref2), rtol=1e-5, atol=1e-5)

    print("KERNEL_OK")
</pallas_src>

<mosaic_0001>
module attributes {stable_mosaic.version = 11 : i64} {
  func.func @_encoder_kernel(%arg0: i32, %arg1: memref<4x16xf32, #tpu.memory_space<vmem>>, %arg2: memref<4x1xf32, #tpu.memory_space<vmem>>, %arg3: memref<128x16xf32, #tpu.memory_space<vmem>>, %arg4: memref<4x128xf32, #tpu.memory_space<vmem>>) attributes {dimension_semantics = [#tpu.dimension_semantics<parallel>], iteration_bounds = array<i64: 1>, scalar_prefetch = 0 : i64, scratch_operands = 0 : i64, tpu.core_type = #tpu.core_type<tc>, window_params = [{pipeline_mode = #tpu.pipeline_mode<synchronous>, transform_indices = @transform_0, window_bounds = array<i64: 4, 16>}, {pipeline_mode = #tpu.pipeline_mode<synchronous>, transform_indices = @transform_1, window_bounds = array<i64: 4, 1>}, {transform_indices = @transform_2, window_bounds = array<i64: 128, 16>}, {transform_indices = @transform_3, window_bounds = array<i64: 4, 128>}]} {
    %c0 = arith.constant 0 : index
    %c0_0 = arith.constant 0 : index
    %0 = vector.load %arg1[%c0, %c0_0] : memref<4x16xf32, #tpu.memory_space<vmem>>, vector<4x16xf32>
    %c0_1 = arith.constant 0 : index
    %c0_2 = arith.constant 0 : index
    %1 = vector.load %arg3[%c0_1, %c0_2] : memref<128x16xf32, #tpu.memory_space<vmem>>, vector<128x16xf32>
    %cst = arith.constant dense<0.000000e+00> : vector<4x128xf32>
    %2 = tpu.matmul %0, %1, %cst {dimension_numbers = #tpu.dot_dimension_numbers<[1], [1], [0], [0], [0, 0, 1, 0], [], []>} : vector<4x16xf32>, vector<128x16xf32>, vector<4x128xf32> -> vector<4x128xf32>
    %c0_3 = arith.constant 0 : index
    %c0_4 = arith.constant 0 : index
    %3 = vector.load %arg2[%c0_3, %c0_4] : memref<4x1xf32, #tpu.memory_space<vmem>>, vector<4x1xf32>
    %4 = vector.broadcast %3 : vector<4x1xf32> to vector<4x128xf32>
    %5 = arith.addf %2, %4 : vector<4x128xf32>
    %6 = arith.negf %5 : vector<4x128xf32>
    %7 = math.exp %6 : vector<4x128xf32>
    %cst_5 = arith.constant 1.000000e+00 : f32
    %8 = vector.broadcast %cst_5 : f32 to vector<4x128xf32>
    %9 = arith.addf %8, %7 : vector<4x128xf32>
    %10 = arith.divf %8, %9 : vector<4x128xf32>
    %c0_6 = arith.constant 0 : index
    %c0_7 = arith.constant 0 : index
    %11 = vector.load %arg4[%c0_6, %c0_7] : memref<4x128xf32, #tpu.memory_space<vmem>>, vector<4x128xf32>
    tpu.vector_store %arg4[%c0_6, %c0_7], %10 {strides = array<i32>} : memref<4x128xf32, #tpu.memory_space<vmem>>, vector<4x128xf32>,
    return
  }
  func.func @transform_0(%arg0: i32) -> (i32, i32) {
    %c0_i32 = arith.constant 0 : i32
    %c0_i32_0 = arith.constant 0 : i32
    %c0_i32_1 = arith.constant 0 : i32
    return %c0_i32, %c0_i32_0 : i32, i32
  }
  func.func @transform_1(%arg0: i32) -> (i32, i32) {
    %c0_i32 = arith.constant 0 : i32
    %c0_i32_0 = arith.constant 0 : i32
    %c0_i32_1 = arith.constant 0 : i32
    return %c0_i32, %c0_i32_0 : i32, i32
  }
  func.func @transform_2(%arg0: i32) -> (i32, i32) {
    %c0_i32 = arith.constant 0 : i32
    %c0_i32_0 = arith.constant 0 : i32
    return %arg0, %c0_i32 : i32, i32
  }
  func.func @transform_3(%arg0: i32) -> (i32, i32) {
    %c0_i32 = arith.constant 0 : i32
    %c0_i32_0 = arith.constant 0 : i32
    return %c0_i32, %arg0 : i32, i32
  }
}

</mosaic_0001>

<bundles_post_ra>
// kernel: tpu_custom_call.1
= control target key start
LH: loop header
LB: loop body
LE: loop exit
PB: predicated region body
PF: predicated region fallthrough
CT: control target
= control target key end

     0   :  { %vm38_vm0 = vcmask 130048   ;;  %v282_v1 = vmov 0.0   ;;  %vm283_vm1 = vmmov 0   ;;  %v284_v2 = vmov 0   ;;  %s380_s0 = inlined_call_operand.vmem [shape: f32[4,16], index: 0, kind: input, shape index: {}]   ;;  %s381_s1 = inlined_call_operand.vmem [shape: f32[4,1], index: 1, kind: input, shape index: {}]   ;;  %s382_s2 = inlined_call_operand.vmem [shape: f32[128,16], index: 2, kind: input, shape index: {}]   ;;  %s383_s3 = inlined_call_operand.hbm [shape: f32[4,128], index: 3, kind: output, shape index: {}]  }
   0x1   :  { %v31_v0 = vld [vmem:[%s382_s2 + $0x78] sm:$0xff]  ;;  %216 = vmatprep.subr.mxu0 %v282_v1  ;;  %248 = vmatprep.mubr.msk.f32.mxu0 %vm283_vm1, %v282_v1  ;;  %v30_v3 = vld [vmem:[%s382_s2 + $0x70] sm:$0xff]  ;;  %v32_v4 = vld [vmem:[%s381_s1] sm:$0xf] }
   0x2   :  { %217 = vmatpush3.xpose.msk.msra.mxu0 %vm38_vm0, %v31_v0  ;;  %255 = vset.pattern.permute.xlu0 %v284_v2 }
   0x3   :  { %218 = vmatprep.subr.mxu0 %v282_v1  ;;  %35 = vperm.xlu0 %255, %v32_v4  }
   0x6   :  { %219 = vmatpush3.xpose.msk.msra.mxu0 %vm38_vm0, %v30_v3 }
   0x7   :  { %8 = vsyncpa [#allocation3], 0  ;;  %220 = vmatprep.subr.mxu0 %v282_v1  ;;  %v29_v5 = vld [vmem:[%s382_s2 + $0x68] sm:$0xff]  ;;  %v28_v6 = vld [vmem:[%s382_s2 + $0x60] sm:$0xff]  ;;  %s285_s20 = smov [#allocation2]  }
   0x8   :  { %v27_v7 = vld [vmem:[%s382_s2 + $0x58] sm:$0xff]  ;;  %v26_v8 = vld [vmem:[%s382_s2 + $0x50] sm:$0xff]  ;;  %v25_v9 = vld [vmem:[%s382_s2 + $0x48] sm:$0xff]  ;;  %s173_s21 = sshll.u32 %s285_s20, 4  ;;  %s174_s21 = int_to_ptr.vmem [resolvable:$true] %s173_s21 }
   0x9   :  { %v24_v10 = vld [vmem:[%s382_s2 + $0x40] sm:$0xff]  ;;  %v23_v11 = vld [vmem:[%s382_s2 + $0x38] sm:$0xff]  ;;  %v22_v12 = vld [vmem:[%s382_s2 + $0x30] sm:$0xff]  ;;  %p265_p1 = scmp.lt.s32.totalorder %s174_s21, %s174_s21 }
   0xa   :  { %221 = vmatpush3.xpose.msk.msra.mxu0 %vm38_vm0, %v29_v5  ;;  %v21_v13 = vld [vmem:[%s382_s2 + $0x28] sm:$0xff]  ;;  %v20_v14 = vld [vmem:[%s382_s2 + $0x20] sm:$0xff]  ;;  %v19_v15 = vld [vmem:[%s382_s2 + $0x18] sm:$0xff] }
   0xb   :  { %222 = vmatprep.subr.mxu0 %v282_v1  ;;  %v18_v16 = vld [vmem:[%s382_s2 + $0x10] sm:$0xff]  ;;  %v17_v17 = vld [vmem:[%s382_s2 + $0x8] sm:$0xff]  ;;  %v16_v18 = vld [vmem:[%s382_s2] sm:$0xff]  ;;  %s260_s2 = scalar_lea.vmem %s174_s21, 64 }
   0xc   :  { %v15_v19 = vld [vmem:[%s380_s0] sm:$0xf]  ;;  %p261_p0 = scmp.ne.s32.totalorder %s174_s21, %s260_s2  ;;  %p266_p2 = scmp.lt.s32.totalorder %s260_s2, %s260_s2 }
   0xe   :  { %223 = vmatpush3.xpose.msk.msra.mxu0 %vm38_vm0, %v28_v6  ;;  %p267_p3 = por %p266_p2, %p265_p1 }
   0xf   :  { %224 = vmatprep.subr.mxu0 %v282_v1 }
  0x10   :  { %p268_p4 = pnand %p267_p3, %p261_p0 }
  0x12   :  { %225 = vmatpush3.xpose.msk.msra.mxu0 %vm38_vm0, %v27_v7 }
  0x13   :  { %226 = vmatprep.subr.mxu0 %v282_v1 }
  0x16   :  { %227 = vmatpush3.xpose.msk.msra.mxu0 %vm38_vm0, %v26_v8 }
  0x17   :  { %228 = vmatprep.subr.mxu0 %v282_v1 }
  0x1a   :  { %229 = vmatpush3.xpose.msk.msra.mxu0 %vm38_vm0, %v25_v9 }
  0x1b   :  { %230 = vmatprep.subr.mxu0 %v282_v1 }
  0x1e   :  { %231 = vmatpush3.xpose.msk.msra.mxu0 %vm38_vm0, %v24_v10 }
  0x1f   :  { %232 = vmatprep.subr.mxu0 %v282_v1 }
  0x22   :  { %233 = vmatpush3.xpose.msk.msra.mxu0 %vm38_vm0, %v23_v11 }
  0x23   :  { %234 = vmatprep.subr.mxu0 %v282_v1 }
  0x26   :  { %235 = vmatpush3.xpose.msk.msra.mxu0 %vm38_vm0, %v22_v12 }
  0x27   :  { %236 = vmatprep.subr.mxu0 %v282_v1 }
  0x2a   :  { %237 = vmatpush3.xpose.msk.msra.mxu0 %vm38_vm0, %v21_v13 }
  0x2b   :  { %238 = vmatprep.subr.mxu0 %v282_v1 }
  0x2e   :  { %239 = vmatpush3.xpose.msk.msra.mxu0 %vm38_vm0, %v20_v14 }
  0x2f   :  { %240 = vmatprep.subr.mxu0 %v282_v1 }
  0x32   :  { %241 = vmatpush3.xpose.msk.msra.mxu0 %vm38_vm0, %v19_v15 }
  0x33   :  { %242 = vmatprep.subr.mxu0 %v282_v1 }
  0x36   :  { %243 = vmatpush3.xpose.msk.msra.mxu0 %vm38_vm0, %v18_v16 }
  0x37   :  { %244 = vmatprep.subr.mxu0 %v282_v1 }
  0x3a   :  { %245 = vmatpush3.xpose.msk.msra.mxu0 %vm38_vm0, %v17_v17 }
  0x3b   :  { %246 = vmatprep.subr.mxu0 %v282_v1 }
  0x3e   :  { %247 = vmatpush3.xpose.msk.msra.mxu0 %vm38_vm0, %v16_v18 }
  0x41   :  { %249 = vmatmul.mubr.msk.f32.vlgmr.msra.gmra.mxu0 %vm38_vm0, %v15_v19 }
  0x7e   :  { %v36_v20 = vpop.permute.xlu0 %35 }
 0x101   :  { %v156_v21 = vpop.f32.mrf.mxu0 }
 0x102   :  { %v157_v22 = vadd.f32 %v156_v21, %v36_v20 }
 0x103   :  { %v250_v23 = vpop.f32.mrf.mxu0 }
 0x104   :  { %v198_v24 = vmul.f32 -1.442695, %v157_v22 }
 0x106   :  { %256 = vpow2.f32 %v198_v24 }
 0x113   :  { %v257_v25 = vpop.eup %256 }
 0x114   :  { %v163_v26 = vadd.f32 1.0, %v257_v25 }
 0x116   :  { %258 = vrcp.f32 %v163_v26 }
 0x123   :  { %v259_v27 = vpop.eup %258 }
 0x124   :  { %166 = vst [vmem:[#allocation2] sm:$0xf] %v259_v27 }
 0x125   :  { %271 = shalt.err (!%p268_p4)
}
 0x126   :  { %176 = dma.vmem_to_hbm [thread:$0]  %s174_s21, 64, %s383_s3, [#allocation3]  }
 0x127   :  { %280 = dma.done.wait [#allocation3], 64  }
 0x128   :  { %281 = vsyncadd [#allocation3], 4294967232 }
 0x129   :  { %180 = vsyncpa [#allocation3], 1 }

</bundles_post_ra>
